<compile_context>
chip_gen: v7x
topology: tpu7x:2x2x1
jax: 0.10.0
libtpu: 0.0.40
codegen_flags: <defaults>
</compile_context>

<pallas_src>
import jax
import jax.numpy as jnp
from jax.experimental import pallas as pl
from jax.experimental.pallas import tpu as pltpu


def _round_up(x, m):
    return ((x + m - 1) // m) * m


def _cdiv(a, b):
    return (a + b - 1) // b


def _pick_tiles(n, adj_dtype, tm=None, tn=None):
    """Tile sizes safe on v5e/v6e/v7x scoped-VMEM defaults, megacore-friendly."""
    itemsize = jnp.dtype(adj_dtype).itemsize
    if tn is None:
        # Wider column tile for narrow adjacency dtypes: amortizes the ~0.35us
        # per-grid-step overhead while keeping the double-buffered adjacency tile
        # <= 8 MiB.
        tn = 8192 if itemsize <= 2 else 4096
    if tm is None:
        tm = 256                      # multiple of 32 -> native int8 sublane tile
    tm = max(32, min(tm, _round_up(n, 32)))
    tn = max(128, min(tn, _round_up(n, 128)))
    # Keep >= 2 row tiles for medium graphs so both v7x TensorCores get work.
    if tm >= n and n > 64:
        tm = max(32, _round_up(_cdiv(n, 2), 32))
    # Conservative 12 MiB cap for the double-buffered adjacency stream (fits the
    # 16 MiB v5e scoped-VMEM default with room for the small side buffers).
    while 2 * tm * tn * itemsize > (12 << 20) and tn > 512:
        tn //= 2
    return tm, tn


def _make_kernel(n, tm, tn):
    """Kernel factory: n / tile sizes are baked in as compile-time constants."""
    n_col_tiles = _cdiv(n, tn)
    last_col0 = (n_col_tiles - 1) * tn          # first column of the last tile
    ragged_cols = (n % tn) != 0
    groups = tn // 128                          # 128-lane groups per column tile

    def kernel(proj_row_ref, proj_col_ref, adj_ref, prev_ref, w_phi_ref,
               out_ref, max_acc, col_splat):
        # proj_row_ref : (1, TN)   f32          proj[j] for this column tile
        # proj_col_ref : (TM, 1)   f32          proj[i] for this row tile
        # adj_ref      : (TM, TN)  <any dtype>  adjacency tile, streamed from HBM
        # prev_ref     : (TM, 1)   f32          previous inclusion score (residual)
        # w_phi_ref    : (1, 1)    f32          W_phi scalar
        # out_ref      : (TM, 1)   f32          written only at the last column tile
        # max_acc      : (TM, 128) f32 scratch  per-lane running maxima
        # col_splat    : (TM, 128) f32 scratch  lane-broadcast proj[i] (hoisted)
        j = pl.program_id(1)
        last_j = pl.num_programs(1) - 1

        @pl.when(j == 0)
        def _init():
            col_splat[...] = jnp.broadcast_to(proj_col_ref[...], col_splat.shape)
            max_acc[...] = jnp.full(max_acc.shape, -jnp.inf, max_acc.dtype)

        def accumulate(ragged):
            acc = max_acc[...]
            csplat = col_splat[...]
            for g in range(groups):
                lo = g * 128
                if ragged and last_col0 + lo >= n:
                    continue                                   # group fully OOB
                wo_g = proj_row_ref[:, lo:lo + 128] - csplat   # (TM, 128)
                masked_g = wo_g * adj_ref[:, lo:lo + 128].astype(jnp.float32)
                if ragged and last_col0 + lo + 128 > n:        # partial group
                    lane = jax.lax.broadcasted_iota(jnp.int32, masked_g.shape, 1)
                    masked_g = jnp.where(lane < (n - last_col0 - lo),
                                         masked_g, -jnp.inf)
                acc = jnp.maximum(acc, masked_g)
            max_acc[...] = acc

        if ragged_cols:
            # Full tiles pay zero masking cost; only the last column tile masks
            # (and only its single partial lane-group emits the iota/select).
            @pl.when(j != last_j)
            def _full_tiles():
                accumulate(False)

            @pl.when(j == last_j)
            def _ragged_tile():
                accumulate(True)
        else:
            accumulate(False)

        @pl.when(j == last_j)
        def _finalize():
            # Single cross-lane reduce + lane-sparse store per row tile.
            row_max = jnp.max(max_acc[...], axis=1, keepdims=True)     # (TM, 1)
            out_ref[...] = prev_ref[...] + w_phi_ref[...] * row_max

    return kernel


def devconv_forward(previous_inclusion_score, nodes, adjacency_matrix,
                    w_theta, w_phi, return_flatten=True, tm=None, tn=None):
    """Mirrors DevConv.forward for output_dimension == 1."""
    n = nodes.shape[0]
    # TODO(synk): only output_dimension == 1 is implemented (the reference's D > 1
    # branch with the mean reduction is not exercised by this module's usage).
    if int(jnp.size(w_theta)) != 3:
        raise NotImplementedError("devconv_forward supports output_dimension == 1")

    nodes = nodes.astype(jnp.float32)
    w_theta = jnp.asarray(w_theta, jnp.float32).reshape(3, 1)
    w_phi_2d = jnp.asarray(w_phi, jnp.float32).reshape(1, 1)

    # Per-node projection (tiny (N,3)@(3,1) glue): wo[i, j] = proj[j] - proj[i].
    proj = nodes @ w_theta                                   # (N, 1)
    proj_row = proj.reshape(1, n)                            # (1, N) lane-dense
    proj_col = proj                                          # (N, 1)

    has_prev = (previous_inclusion_score is not None
                and previous_inclusion_score.size > 0)
    prev = (previous_inclusion_score.astype(jnp.float32).reshape(n, 1)
            if has_prev else jnp.zeros((n, 1), jnp.float32))

    tm, tn = _pick_tiles(n, adjacency_matrix.dtype, tm, tn)
    grid = (_cdiv(n, tm), _cdiv(n, tn))

    score = pl.pallas_call(
        _make_kernel(n, tm, tn),
        out_shape=jax.ShapeDtypeStruct((n, 1), jnp.float32),
        grid_spec=pltpu.PrefetchScalarGridSpec(
            num_scalar_prefetch=0,
            grid=grid,
            in_specs=[
                pl.BlockSpec((1, tn), lambda i, j: (0, j)),    # proj_row
                pl.BlockSpec((tm, 1), lambda i, j: (i, 0)),    # proj_col
                pl.BlockSpec((tm, tn), lambda i, j: (i, j)),   # adjacency (as stored)
                pl.BlockSpec((tm, 1), lambda i, j: (i, 0)),    # previous score
                pl.BlockSpec((1, 1), lambda i, j: (0, 0)),     # W_phi
            ],
            out_specs=pl.BlockSpec((tm, 1), lambda i, j: (i, 0)),
            scratch_shapes=[pltpu.VMEM((tm, 128), jnp.float32),   # lane-dense max
                            pltpu.VMEM((tm, 128), jnp.float32)],  # proj_col splat
        ),
        compiler_params=pltpu.CompilerParams(
            dimension_semantics=("parallel", "arbitrary")),
    )(proj_row, proj_col, adjacency_matrix, prev, w_phi_2d)

    # TODO(synk): the reference calls `torch.Tensor.sparse_resize_()` with no args
    # (a no-op / bug); intentionally not reproduced.
    out = score[:, 0]                    # (N,)
    # For output_dimension == 1 the reference's `flatten()` is a no-op; the
    # return_flatten flag is kept only for API parity.
    del return_flatten
    return out


def devconv_reference(previous_inclusion_score, nodes, adjacency_matrix,
                      w_theta, w_phi):
    """Plain-JAX reference matching the PyTorch math (D == 1)."""
    dist = nodes[None, :, :] - nodes[:, None, :]             # (N, N, 3)
    wo = jnp.squeeze(dist @ w_theta.reshape(3, 1), axis=-1)  # (N, N)
    masked = wo * adjacency_matrix.astype(jnp.float32)
    max_d = jnp.max(masked, axis=1)                          # (N,)
    score = w_phi.reshape(()) * max_d
    if previous_inclusion_score is not None and previous_inclusion_score.size > 0:
        return previous_inclusion_score + score
    return score


if __name__ == "__main__":
    key = jax.random.PRNGKey(0)
    k_n1, k_a1, k_p1, k_wt, k_wp, k_n2, k_a2 = jax.random.split(key, 7)

    OUTPUT_DIMENSION = 1
    w_theta = jax.random.normal(k_wt, (3, OUTPUT_DIMENSION), jnp.float32)
    w_phi = jax.random.normal(k_wp, (OUTPUT_DIMENSION,), jnp.float32)

    # Case 1: small graph, residual path, float32 adjacency, single-tile grid.
    N1 = 16
    nodes1 = jax.random.normal(k_n1, (N1, 3), jnp.float32)
    adj1 = (jax.random.uniform(k_a1, (N1, N1)) > 0.5).astype(jnp.float32)
    prev1 = jax.random.normal(k_p1, (N1,), jnp.float32)

    out1 = jax.block_until_ready(devconv_forward(prev1, nodes1, adj1, w_theta, w_phi))
    ref1 = devconv_reference(prev1, nodes1, adj1, w_theta, w_phi)
    assert out1.shape == (N1,)
    assert jnp.allclose(out1, ref1, atol=2e-5, rtol=2e-5)

    # Case 2: ragged N (not a multiple of any tile), int8 adjacency stored narrow
    # upstream, empty previous score, forced small tiles -> multi-tile grid with
    # full + ragged column tiles and ragged row tiles.
    N2 = 300
    nodes2 = jax.random.normal(k_n2, (N2, 3), jnp.float32)
    adj2 = (jax.random.uniform(k_a2, (N2, N2)) > 0.7).astype(jnp.int8)

    out2 = jax.block_until_ready(
        devconv_forward(jnp.zeros((0,), jnp.float32), nodes2, adj2,
                        w_theta, w_phi, return_flatten=True, tm=128, tn=128))
    ref2 = devconv_reference(jnp.zeros((0,), jnp.float32), nodes2, adj2,
                             w_theta, w_phi)
    assert out2.shape == (N2,)
    assert jnp.allclose(out2, ref2, atol=2e-5, rtol=2e-5)

    # Case 3: same graph with the default (auto-picked) tiling — single ragged
    # column tile, two row tiles.
    out3 = jax.block_until_ready(
        devconv_forward(jnp.zeros((0,), jnp.float32), nodes2, adj2, w_theta, w_phi))
    assert out3.shape == (N2,)
    assert jnp.allclose(out3, ref2, atol=2e-5, rtol=2e-5)

    print("KERNEL_OK")
</pallas_src>

<mosaic_0001>
module attributes {stable_mosaic.version = 11 : i64} {
  func.func @kernel(%arg0: i32, %arg1: i32, %arg2: memref<1x128xf32, #tpu.memory_space<vmem>>, %arg3: memref<32x1xf32, #tpu.memory_space<vmem>>, %arg4: memref<32x128xf32, #tpu.memory_space<vmem>>, %arg5: memref<32x1xf32, #tpu.memory_space<vmem>>, %arg6: memref<1x1xf32, #tpu.memory_space<vmem>>, %arg7: memref<32x1xf32, #tpu.memory_space<vmem>>, %arg8: memref<32x128xf32, #tpu.memory_space<vmem>>, %arg9: memref<32x128xf32, #tpu.memory_space<vmem>>) attributes {dimension_semantics = [#tpu.dimension_semantics<parallel>, #tpu.dimension_semantics<arbitrary>], iteration_bounds = array<i64: 1, 1>, scalar_prefetch = 0 : i64, scratch_operands = 2 : i64, tpu.core_type = #tpu.core_type<tc>, window_params = [{transform_indices = @transform_0, window_bounds = array<i64: 1, 128>}, {transform_indices = @transform_1, window_bounds = array<i64: 32, 1>}, {transform_indices = @transform_2, window_bounds = array<i64: 32, 128>}, {transform_indices = @transform_3, window_bounds = array<i64: 32, 1>}, {pipeline_mode = #tpu.pipeline_mode<synchronous>, transform_indices = @transform_4, window_bounds = array<i64: 1, 1>}, {transform_indices = @transform_5, window_bounds = array<i64: 32, 1>}]} {
    %c0_i32 = arith.constant 0 : i32
    %0 = arith.cmpi eq, %arg1, %c0_i32 : i32
    %1 = arith.extui %0 : i1 to i32
    %c0_i32_0 = arith.constant 0 : i32
    %2 = arith.cmpi ne, %1, %c0_i32_0 : i32
    scf.if %2 {
      %c0 = arith.constant 0 : index
      %c0_7 = arith.constant 0 : index
      %12 = vector.load %arg3[%c0, %c0_7] : memref<32x1xf32, #tpu.memory_space<vmem>>, vector<32x1xf32>
      %13 = vector.shape_cast %12 : vector<32x1xf32> to vector<32x1xf32>
      %14 = vector.broadcast %13 : vector<32x1xf32> to vector<32x128xf32>
      %c0_8 = arith.constant 0 : index
      %c0_9 = arith.constant 0 : index
      %15 = vector.load %arg9[%c0_8, %c0_9] : memref<32x128xf32, #tpu.memory_space<vmem>>, vector<32x128xf32>
      tpu.vector_store %arg9[%c0_8, %c0_9], %14 {strides = array<i32>} : memref<32x128xf32, #tpu.memory_space<vmem>>, vector<32x128xf32>,
      %cst = arith.constant 0xFF800000 : f32
      %16 = vector.broadcast %cst : f32 to vector<32x128xf32>
      %c0_10 = arith.constant 0 : index
      %c0_11 = arith.constant 0 : index
      %17 = vector.load %arg8[%c0_10, %c0_11] : memref<32x128xf32, #tpu.memory_space<vmem>>, vector<32x128xf32>
      tpu.vector_store %arg8[%c0_10, %c0_11], %16 {strides = array<i32>} : memref<32x128xf32, #tpu.memory_space<vmem>>, vector<32x128xf32>,
    } else {
    }
    %c0_i32_1 = arith.constant 0 : i32
    %3 = arith.cmpi ne, %arg1, %c0_i32_1 : i32
    %4 = arith.extui %3 : i1 to i32
    %c0_i32_2 = arith.constant 0 : i32
    %5 = arith.cmpi ne, %4, %c0_i32_2 : i32
    scf.if %5 {
      %c0 = arith.constant 0 : index
      %c0_7 = arith.constant 0 : index
      %12 = vector.load %arg8[%c0, %c0_7] : memref<32x128xf32, #tpu.memory_space<vmem>>, vector<32x128xf32>
      %c0_8 = arith.constant 0 : index
      %c0_9 = arith.constant 0 : index
      %13 = vector.load %arg9[%c0_8, %c0_9] : memref<32x128xf32, #tpu.memory_space<vmem>>, vector<32x128xf32>
      %c0_10 = arith.constant 0 : index
      %c0_11 = arith.constant 0 : index
      %14 = vector.load %arg2[%c0_10, %c0_11] : memref<1x128xf32, #tpu.memory_space<vmem>>, vector<1x128xf32>
      %15 = vector.broadcast %14 : vector<1x128xf32> to vector<32x128xf32>
      %16 = arith.subf %15, %13 : vector<32x128xf32>
      %c0_12 = arith.constant 0 : index
      %c0_13 = arith.constant 0 : index
      %17 = vector.load %arg4[%c0_12, %c0_13] : memref<32x128xf32, #tpu.memory_space<vmem>>, vector<32x128xf32>
      %18 = arith.mulf %16, %17 : vector<32x128xf32>
      %19 = arith.maximumf %12, %18 : vector<32x128xf32>
      %c0_14 = arith.constant 0 : index
      %c0_15 = arith.constant 0 : index
      %20 = vector.load %arg8[%c0_14, %c0_15] : memref<32x128xf32, #tpu.memory_space<vmem>>, vector<32x128xf32>
      tpu.vector_store %arg8[%c0_14, %c0_15], %19 {strides = array<i32>} : memref<32x128xf32, #tpu.memory_space<vmem>>, vector<32x128xf32>,
    } else {
    }
    %c0_i32_3 = arith.constant 0 : i32
    %6 = arith.cmpi eq, %arg1, %c0_i32_3 : i32
    %7 = arith.extui %6 : i1 to i32
    %c0_i32_4 = arith.constant 0 : i32
    %8 = arith.cmpi ne, %7, %c0_i32_4 : i32
    scf.if %8 {
      %c0 = arith.constant 0 : index
      %c0_7 = arith.constant 0 : index
      %12 = vector.load %arg8[%c0, %c0_7] : memref<32x128xf32, #tpu.memory_space<vmem>>, vector<32x128xf32>
      %c0_8 = arith.constant 0 : index
      %c0_9 = arith.constant 0 : index
      %13 = vector.load %arg9[%c0_8, %c0_9] : memref<32x128xf32, #tpu.memory_space<vmem>>, vector<32x128xf32>
      %c0_10 = arith.constant 0 : index
      %c0_11 = arith.constant 0 : index
      %14 = vector.load %arg2[%c0_10, %c0_11] : memref<1x128xf32, #tpu.memory_space<vmem>>, vector<1x128xf32>
      %15 = vector.broadcast %14 : vector<1x128xf32> to vector<32x128xf32>
      %16 = arith.subf %15, %13 : vector<32x128xf32>
      %c0_12 = arith.constant 0 : index
      %c0_13 = arith.constant 0 : index
      %17 = vector.load %arg4[%c0_12, %c0_13] : memref<32x128xf32, #tpu.memory_space<vmem>>, vector<32x128xf32>
      %18 = arith.mulf %16, %17 : vector<32x128xf32>
      %19 = tpu.iota {dimensions = array<i32: 1>} : vector<32x128xi32>
      %c16_i32 = arith.constant 16 : i32
      %20 = vector.broadcast %c16_i32 : i32 to vector<32x128xi32>
      %21 = arith.cmpi slt, %19, %20 : vector<32x128xi32>
      %cst = arith.constant 0xFF800000 : f32
      %22 = vector.broadcast %cst : f32 to vector<32x128xf32>
      %23 = arith.select %21, %18, %22 : vector<32x128xi1>, vector<32x128xf32>
      %24 = arith.maximumf %12, %23 : vector<32x128xf32>
      %c0_14 = arith.constant 0 : index
      %c0_15 = arith.constant 0 : index
      %25 = vector.load %arg8[%c0_14, %c0_15] : memref<32x128xf32, #tpu.memory_space<vmem>>, vector<32x128xf32>
      tpu.vector_store %arg8[%c0_14, %c0_15], %24 {strides = array<i32>} : memref<32x128xf32, #tpu.memory_space<vmem>>, vector<32x128xf32>,
    } else {
    }
    %c0_i32_5 = arith.constant 0 : i32
    %9 = arith.cmpi eq, %arg1, %c0_i32_5 : i32
    %10 = arith.extui %9 : i1 to i32
    %c0_i32_6 = arith.constant 0 : i32
    %11 = arith.cmpi ne, %10, %c0_i32_6 : i32
    scf.if %11 {
      %c0 = arith.constant 0 : index
      %c0_7 = arith.constant 0 : index
      %12 = vector.load %arg8[%c0, %c0_7] : memref<32x128xf32, #tpu.memory_space<vmem>>, vector<32x128xf32>
      %cst = arith.constant dense<0xFF800000> : vector<32xf32>
      %13 = vector.multi_reduction <maximumf>, %12, %cst [1] : vector<32x128xf32> to vector<32xf32>
      %14 = vector.shape_cast %13 : vector<32xf32> to vector<32x1xf32>
      %c0_8 = arith.constant 0 : index
      %c0_9 = arith.constant 0 : index
      %15 = vector.load %arg5[%c0_8, %c0_9] : memref<32x1xf32, #tpu.memory_space<vmem>>, vector<32x1xf32>
      %c0_10 = arith.constant 0 : index
      %c0_11 = arith.constant 0 : index
      %16 = vector.load %arg6[%c0_10, %c0_11] : memref<1x1xf32, #tpu.memory_space<vmem>>, vector<1x1xf32>
      %17 = vector.broadcast %16 : vector<1x1xf32> to vector<32x1xf32>
      %18 = arith.mulf %17, %14 : vector<32x1xf32>
      %19 = arith.addf %15, %18 : vector<32x1xf32>
      %c0_12 = arith.constant 0 : index
      %c0_13 = arith.constant 0 : index
      %20 = vector.load %arg7[%c0_12, %c0_13] : memref<32x1xf32, #tpu.memory_space<vmem>>, vector<32x1xf32>
      tpu.vector_store %arg7[%c0_12, %c0_13], %19 {strides = array<i32>} : memref<32x1xf32, #tpu.memory_space<vmem>>, vector<32x1xf32>,
    } else {
    }
    return
  }
  func.func @transform_0(%arg0: i32, %arg1: i32) -> (i32, i32) {
    %c0_i32 = arith.constant 0 : i32
    %c0_i32_0 = arith.constant 0 : i32
    return %c0_i32, %arg1 : i32, i32
  }
  func.func @transform_1(%arg0: i32, %arg1: i32) -> (i32, i32) {
    %c0_i32 = arith.constant 0 : i32
    %c0_i32_0 = arith.constant 0 : i32
    return %arg0, %c0_i32 : i32, i32
  }
  func.func @transform_2(%arg0: i32, %arg1: i32) -> (i32, i32) {
    %c0_i32 = arith.constant 0 : i32
    return %arg0, %arg1 : i32, i32
  }
  func.func @transform_3(%arg0: i32, %arg1: i32) -> (i32, i32) {
    %c0_i32 = arith.constant 0 : i32
    %c0_i32_0 = arith.constant 0 : i32
    return %arg0, %c0_i32 : i32, i32
  }
  func.func @transform_4(%arg0: i32, %arg1: i32) -> (i32, i32) {
    %c0_i32 = arith.constant 0 : i32
    %c0_i32_0 = arith.constant 0 : i32
    %c0_i32_1 = arith.constant 0 : i32
    return %c0_i32, %c0_i32_0 : i32, i32
  }
  func.func @transform_5(%arg0: i32, %arg1: i32) -> (i32, i32) {
    %c0_i32 = arith.constant 0 : i32
    %c0_i32_0 = arith.constant 0 : i32
    return %arg0, %c0_i32 : i32, i32
  }
}

</mosaic_0001>

<bundles_post_ra>
// kernel: tpu_custom_call.1
= control target key start
LH: loop header
LB: loop body
LE: loop exit
PB: predicated region body
PF: predicated region fallthrough
CT: control target
= control target key end

     0   :  { %s305_s0 = inlined_call_operand.vmem [shape: f32[1,16], index: 0, kind: input, shape index: {}]   ;;  %s306_s1 = inlined_call_operand.vmem [shape: f32[16,1], index: 1, kind: input, shape index: {}]   ;;  %s307_s2 = inlined_call_operand.vmem [shape: f32[16,16], index: 2, kind: input, shape index: {}]   ;;  %s308_s3 = inlined_call_operand.vmem [shape: f32[16,1], index: 3, kind: input, shape index: {}]   ;;  %s309_s4 = inlined_call_operand.<no memory space> [shape: f32[1,1], index: 4, kind: input, shape index: {}]   ;;  %s310_s5 = inlined_call_operand.vmem [shape: f32[16,1], index: 5, kind: output, shape index: {}]  }
   0x1   :  { %v10_v0 = vstv %s309_s4 }
   0x2   :  { %11 = vst [vmem:[#allocation4] sm:$0x1] %v10_v0 }
   0x3   :  { %v26_v1 = vld [vmem:[%s306_s1] sm:$0xff]  ;;  %v28_v2 = vld [vmem:[%s306_s1 + $0x10] sm:$0xff]  ;;  %v228_v3 = vmov 0   ;;  %v27_v4 = vld [vmem:[%s306_s1 + $0x8] sm:$0xff]  ;;  %v127_v6 = vlaneseq  ;;  %vm173_vm1 = vcmask 7168  }
   0x4   :  { %226 = vset.pattern.permute.xlu0 %v228_v3  ;;  %227 = vset.pattern.permute.xlu1 %v228_v3  ;;  %v29_v5 = vld [vmem:[%s306_s1 + $0x18] sm:$0xff]  ;;  %v223_v7 = vld [vmem:[%s305_s0] ss:$0 sm:$0xff]  ;;  %v121_v12 = vld [vmem:[%s307_s2 + $0x10] sm:$0xff] }
   0x5   :  { %32 = vperm.xlu0 %226, %v26_v1   ;;  %42 = vperm.xlu1 %227, %v28_v2   ;;  %v128_v8 = vand.u32 127, %v127_v6  ;;  %v119_v11 = vld [vmem:[%s307_s2] sm:$0xff]  ;;  %v120_v19 = vld [vmem:[%s307_s2 + $0x8] sm:$0xff]  ;;  %v122_v20 = vld [vmem:[%s307_s2 + $0x18] sm:$0xff] }
   0x6   :  { %v154_v30 = vld [vmem:[%s308_s3] sm:$0xff]  ;;  %v155_v34 = vld [vmem:[%s308_s3 + $0x8] sm:$0xff] }
   0x7   :  { %vm129_vm0 = vcmp.lt.s32.totalorder %v128_v8, 16 }
   0x9   :  { %37 = vperm.xlu0 %226, %v27_v4   ;;  %47 = vperm.xlu1 %227, %v29_v5   ;;  %v224_v29 = vld [vmem:[#allocation4] ss:$0 sm:$0xff] }
  0x84   :  { %v33_v9 = vpop.permute.xlu0 %32  ;;  %v43_v10 = vpop.permute.xlu1 %42 }
  0x85   :  { %v115_v13 = vsub.f32 %v223_v7, %v33_v9  ;;  %v117_v14 = vsub.f32 %v223_v7, %v43_v10 }
  0x87   :  { %v123_v15 = vmul.f32 %v119_v11, %v115_v13  ;;  %v125_v16 = vmul.f32 %v121_v12, %v117_v14 }
  0x88   :  { %v38_v17 = vpop.permute.xlu0 %37  ;;  %v48_v18 = vpop.permute.xlu1 %47 }
  0x89   :  { %v116_v21 = vsub.f32 %v223_v7, %v38_v17  ;;  %v130_v22 = vsel %vm129_vm0, %v123_v15, -inf  ;;  %v118_v23 = vsub.f32 %v223_v7, %v48_v18  ;;  %v132_v24 = vsel %vm129_vm0, %v125_v16, -inf }
  0x8a   :  { %146 = vmax.xlane.f32.xlu0 %v130_v22 }
  0x8b   :  { %v124_v25 = vmul.f32 %v120_v19, %v116_v21  ;;  %v126_v26 = vmul.f32 %v122_v20, %v118_v23 }
  0x8d   :  { %v131_v27 = vsel %vm129_vm0, %v124_v25, -inf  ;;  %v133_v28 = vsel %vm129_vm0, %v126_v26, -inf }
  0x8e   :  { %150 = vmax.xlane.f32.xlu0 %v132_v24  ;;  %148 = vmax.xlane.f32.xlu1 %v131_v27 }
  0x92   :  { %152 = vmax.xlane.f32.xlu0 %v133_v28 }
 0x117   :  { %v147_v31 = vpop.xlane.xlu0 %146 }
 0x118   :  { %v165_v32 = vmul.f32 %v224_v29, %v147_v31 }
 0x11a   :  { %v169_v33 = vadd.f32 %v165_v32, %v154_v30 }
 0x11b   :  { %v149_v35 = vpop.xlane.xlu1 %148  ;;  %v151_v36 = vpop.xlane.xlu0 %150 }
 0x11c   :  { %174 = vst.msk [vmem:[#allocation5] sm:$0xff] %vm173_vm1, %v169_v33  ;;  %v166_v37 = vmul.f32 %v224_v29, %v149_v35 }
 0x11e   :  { %v170_v38 = vadd.f32 %v166_v37, %v155_v34 }
 0x11f   :  { %v153_v39 = vpop.xlane.xlu0 %152 }
 0x120   :  { %175 = vst.msk [vmem:[#allocation5 + $0x8] sm:$0xff] %vm173_vm1, %v170_v38 }
 0x123   :  { %v209_v40 = vld [vmem:[#allocation5] sm:$0xff] }
 0x124   :  { %210 = vst [vmem:[%s310_s5] sm:$0xff] %v209_v40 }
 0x127   :  { %v211_v41 = vld [vmem:[#allocation5 + $0x8] sm:$0xff] }
 0x128   :  { %212 = vst [vmem:[%s310_s5 + $0x8] sm:$0xff] %v211_v41 }

</bundles_post_ra>
